<compile_context>
chip_gen: v6e
topology: v6e:2x2x1
jax: 0.10.0
libtpu: 0.0.40
codegen_flags: <defaults>
</compile_context>

<pallas_src>
import jax
import jax.numpy as jnp
from jax.experimental import pallas as pl
from jax.experimental.pallas import tpu as pltpu

BN_EPS = 1e-5
LANE = 128


def _round_up(n: int, m: int) -> int:
    return ((n + m - 1) // m) * m


def _bn_relu(h, gamma, beta):
    """Training-mode BatchNorm1d (batch mean, biased batch var) + ReLU, f32.

    Single reduction pass (sum & sum-of-squares), folded scale/shift.
    """
    inv_n = 1.0 / h.shape[0]
    mean = jnp.sum(h, axis=0, keepdims=True) * inv_n
    mean_sq = jnp.sum(h * h, axis=0, keepdims=True) * inv_n
    var = jnp.maximum(mean_sq - mean * mean, 0.0)      # guard f32 cancellation
    scale = gamma * jax.lax.rsqrt(var + BN_EPS)        # rsqrt -> EUP slot
    shift = beta - mean * scale
    return jnp.maximum(h * scale + shift, 0.0)


def _make_kernel(h1: int, h2: int, h3: int, out_pad: int):
    """Build the fused MLP kernel for (possibly padded) layer widths."""

    def mlp_kernel(x_ref, w1_ref, w2_ref, w3_ref, w4_ref, vecs_ref, o_ref):
        # x_ref / w*_ref are bf16 (MXU-native); accumulation + BN math in f32.
        # Layer-1..3 biases intentionally absent (cancelled by BN batch mean).
        h = jnp.dot(x_ref[...], w1_ref[...], preferred_element_type=jnp.float32)
        h = _bn_relu(h, vecs_ref[0:1, :h1], vecs_ref[1:2, :h1])

        h = jnp.dot(h.astype(jnp.bfloat16), w2_ref[...],
                    preferred_element_type=jnp.float32)
        h = _bn_relu(h, vecs_ref[2:3, :h2], vecs_ref[3:4, :h2])

        h = jnp.dot(h.astype(jnp.bfloat16), w3_ref[...],
                    preferred_element_type=jnp.float32)
        h = _bn_relu(h, vecs_ref[4:5, :h3], vecs_ref[5:6, :h3])

        out = jnp.dot(h.astype(jnp.bfloat16), w4_ref[...],
                      preferred_element_type=jnp.float32)
        # Lane-dense (out_pad == multiple of 128) unmasked store.
        o_ref[...] = out + vecs_ref[6:7, :out_pad]

    return mlp_kernel


def init_params(key, input_size, lin1, lin2, lin3, output_size):
    """PyTorch-style init: U(-1/sqrt(fan_in), 1/sqrt(fan_in)) for W and b."""
    sizes = [(input_size, lin1), (lin1, lin2), (lin2, lin3), (lin3, output_size)]
    params = []
    for fan_in, fan_out in sizes:
        key, kw, kb = jax.random.split(key, 3)
        bound = 1.0 / jnp.sqrt(jnp.float32(fan_in))
        w = jax.random.uniform(kw, (fan_in, fan_out), jnp.float32, -bound, bound)
        b = jax.random.uniform(kb, (1, fan_out), jnp.float32, -bound, bound)
        params.append((w, b))
    bn = [(jnp.ones((1, n), jnp.float32), jnp.zeros((1, n), jnp.float32))
          for n in (lin1, lin2, lin3)]
    return params, bn


def _pad2(a, rows, cols):
    return jnp.pad(a, ((0, rows - a.shape[0]), (0, cols - a.shape[1])))


def simple_dense_net_forward(x_nchw, params, bn):
    b = x_nchw.shape[0]
    x_flat = x_nchw.reshape(b, -1)                 # glue: flatten NCHW -> [B, F]
    f = x_flat.shape[1]

    (w1, _b1), (w2, _b2), (w3, _b3), (w4, b4) = params   # b1..b3 are BN no-ops
    (g1, be1), (g2, be2), (g3, be3) = bn

    lin1, lin2, lin3 = w1.shape[1], w2.shape[1], w3.shape[1]
    output_size = w4.shape[1]

    # Padded (lane-aligned) widths; zero padding is exact (padded columns stay
    # zero through BN because gamma/beta pad with zeros, and padded weight
    # rows are zero).
    fp = _round_up(f, LANE)
    h1, h2, h3 = (_round_up(n, LANE) for n in (lin1, lin2, lin3))
    out_pad = _round_up(output_size, LANE)
    vw = max(h1, h2, h3, out_pad)

    # bf16 operands for the MXU.
    x_p = _pad2(x_flat.astype(jnp.float32), b, fp).astype(jnp.bfloat16)
    w1p = _pad2(w1, fp, h1).astype(jnp.bfloat16)
    w2p = _pad2(w2, h1, h2).astype(jnp.bfloat16)
    w3p = _pad2(w3, h2, h3).astype(jnp.bfloat16)
    w4p = _pad2(w4, h3, out_pad).astype(jnp.bfloat16)

    # Pack the small per-layer vectors into one [8, vw] f32 tile:
    # rows: g1, be1, g2, be2, g3, be3, b4, (zero pad).
    rows = [g1, be1, g2, be2, g3, be3, b4]
    vecs = jnp.concatenate([_pad2(r, 1, vw) for r in rows], axis=0)
    vecs = jnp.pad(vecs, ((0, 8 - vecs.shape[0]), (0, 0)))

    vmem = pl.BlockSpec(memory_space=pltpu.MemorySpace.VMEM)
    out_padded = pl.pallas_call(
        _make_kernel(h1, h2, h3, out_pad),
        out_shape=jax.ShapeDtypeStruct((b, out_pad), jnp.float32),
        in_specs=[vmem] * 6,
        out_specs=vmem,
    )(x_p, w1p, w2p, w3p, w4p, vecs)

    return out_padded[:, :output_size]             # glue: strip lane padding


def _reference_forward(x_nchw, params, bn):
    """Pure-JAX f32 reference matching the PyTorch module (train-mode BN)."""
    h = x_nchw.reshape(x_nchw.shape[0], -1).astype(jnp.float32)
    (w1, b1), (w2, b2), (w3, b3), (w4, b4) = params
    for (w, bb), (g, be) in zip(((w1, b1), (w2, b2), (w3, b3)), bn):
        h = h @ w + bb
        mean = jnp.mean(h, axis=0, keepdims=True)
        var = jnp.mean((h - mean) ** 2, axis=0, keepdims=True)
        h = (h - mean) * jax.lax.rsqrt(var + BN_EPS) * g + be
        h = jnp.maximum(h, 0.0)
    return h @ w4 + b4


if __name__ == "__main__":
    # Small shapes consistent with the module's forward (NCHW image, flattened).
    B, C, H, W = 8, 2, 8, 8                 # input_size = C*H*W = 128
    INPUT_SIZE = C * H * W
    LIN1 = LIN2 = LIN3 = 128
    OUTPUT_SIZE = 16

    key = jax.random.PRNGKey(0)
    key, kx = jax.random.split(key)
    x = jax.random.normal(kx, (B, C, H, W), jnp.float32)

    params, bn = init_params(key, INPUT_SIZE, LIN1, LIN2, LIN3, OUTPUT_SIZE)

    out = simple_dense_net_forward(x, params, bn)
    out = jax.block_until_ready(out)

    assert out.shape == (B, OUTPUT_SIZE)
    assert jnp.all(jnp.isfinite(out))

    # Correctness vs. f32 reference (kernel uses bf16 matmuls -> loose tol).
    ref = _reference_forward(x, params, bn)
    max_err = float(jnp.max(jnp.abs(out - ref)))
    assert max_err < 0.15, f"max abs error vs reference: {max_err}"

    print("KERNEL_OK")
</pallas_src>

<mosaic_0001>
module attributes {stable_mosaic.version = 11 : i64} {
  func.func @mlp_kernel(%arg0: memref<8x128xbf16, #tpu.memory_space<vmem>>, %arg1: memref<128x128xbf16, #tpu.memory_space<vmem>>, %arg2: memref<128x128xbf16, #tpu.memory_space<vmem>>, %arg3: memref<128x128xbf16, #tpu.memory_space<vmem>>, %arg4: memref<128x128xbf16, #tpu.memory_space<vmem>>, %arg5: memref<8x128xf32, #tpu.memory_space<vmem>>, %arg6: memref<8x128xf32, #tpu.memory_space<vmem>>) attributes {dimension_semantics = [], scalar_prefetch = 0 : i64, scratch_operands = 0 : i64, tpu.core_type = #tpu.core_type<tc>} {
    %c0 = arith.constant 0 : index
    %c0_0 = arith.constant 0 : index
    %0 = vector.load %arg0[%c0, %c0_0] : memref<8x128xbf16, #tpu.memory_space<vmem>>, vector<8x128xbf16>
    %c0_1 = arith.constant 0 : index
    %c0_2 = arith.constant 0 : index
    %1 = vector.load %arg1[%c0_1, %c0_2] : memref<128x128xbf16, #tpu.memory_space<vmem>>, vector<128x128xbf16>
    %cst = arith.constant dense<0.000000e+00> : vector<8x128xf32>
    %2 = tpu.matmul %0, %1, %cst {dimension_numbers = #tpu.dot_dimension_numbers<[1], [0], [0], [1], [0, 0, 1, 1], [], []>} : vector<8x128xbf16>, vector<128x128xbf16>, vector<8x128xf32> -> vector<8x128xf32>
    %c0_3 = arith.constant 0 : index
    %c0_4 = arith.constant 0 : index
    %3 = vector.load %arg5[%c0_3, %c0_4] : memref<8x128xf32, #tpu.memory_space<vmem>>, vector<1x128xf32>
    %c1 = arith.constant 1 : index
    %c0_5 = arith.constant 0 : index
    %4 = vector.load %arg5[%c1, %c0_5] : memref<8x128xf32, #tpu.memory_space<vmem>>, vector<1x128xf32>
    %cst_6 = arith.constant dense<0.000000e+00> : vector<128xf32>
    %5 = vector.multi_reduction <add>, %2, %cst_6 [0] : vector<8x128xf32> to vector<128xf32>
    %6 = vector.shape_cast %5 : vector<128xf32> to vector<1x128xf32>
    %cst_7 = arith.constant 1.250000e-01 : f32
    %7 = vector.broadcast %cst_7 : f32 to vector<1x128xf32>
    %8 = arith.mulf %6, %7 : vector<1x128xf32>
    %9 = arith.mulf %2, %2 : vector<8x128xf32>
    %cst_8 = arith.constant dense<0.000000e+00> : vector<128xf32>
    %10 = vector.multi_reduction <add>, %9, %cst_8 [0] : vector<8x128xf32> to vector<128xf32>
    %11 = vector.shape_cast %10 : vector<128xf32> to vector<1x128xf32>
    %cst_9 = arith.constant 1.250000e-01 : f32
    %12 = vector.broadcast %cst_9 : f32 to vector<1x128xf32>
    %13 = arith.mulf %11, %12 : vector<1x128xf32>
    %14 = arith.mulf %8, %8 : vector<1x128xf32>
    %15 = arith.subf %13, %14 : vector<1x128xf32>
    %cst_10 = arith.constant 0.000000e+00 : f32
    %16 = vector.broadcast %cst_10 : f32 to vector<1x128xf32>
    %17 = arith.maximumf %15, %16 : vector<1x128xf32>
    %cst_11 = arith.constant 9.99999974E-6 : f32
    %18 = vector.broadcast %cst_11 : f32 to vector<1x128xf32>
    %19 = arith.addf %17, %18 : vector<1x128xf32>
    %20 = math.rsqrt %19 : vector<1x128xf32>
    %21 = arith.mulf %3, %20 : vector<1x128xf32>
    %22 = arith.mulf %8, %21 : vector<1x128xf32>
    %23 = arith.subf %4, %22 : vector<1x128xf32>
    %24 = vector.broadcast %21 : vector<1x128xf32> to vector<8x128xf32>
    %25 = arith.mulf %2, %24 : vector<8x128xf32>
    %26 = vector.broadcast %23 : vector<1x128xf32> to vector<8x128xf32>
    %27 = arith.addf %25, %26 : vector<8x128xf32>
    %cst_12 = arith.constant 0.000000e+00 : f32
    %28 = vector.broadcast %cst_12 : f32 to vector<8x128xf32>
    %29 = arith.maximumf %27, %28 : vector<8x128xf32>
    %30 = arith.truncf %29 : vector<8x128xf32> to vector<8x128xbf16>
    %c0_13 = arith.constant 0 : index
    %c0_14 = arith.constant 0 : index
    %31 = vector.load %arg2[%c0_13, %c0_14] : memref<128x128xbf16, #tpu.memory_space<vmem>>, vector<128x128xbf16>
    %cst_15 = arith.constant dense<0.000000e+00> : vector<8x128xf32>
    %32 = tpu.matmul %30, %31, %cst_15 {dimension_numbers = #tpu.dot_dimension_numbers<[1], [0], [0], [1], [0, 0, 1, 1], [], []>} : vector<8x128xbf16>, vector<128x128xbf16>, vector<8x128xf32> -> vector<8x128xf32>
    %c2 = arith.constant 2 : index
    %c0_16 = arith.constant 0 : index
    %33 = vector.load %arg5[%c2, %c0_16] : memref<8x128xf32, #tpu.memory_space<vmem>>, vector<1x128xf32>
    %c3 = arith.constant 3 : index
    %c0_17 = arith.constant 0 : index
    %34 = vector.load %arg5[%c3, %c0_17] : memref<8x128xf32, #tpu.memory_space<vmem>>, vector<1x128xf32>
    %cst_18 = arith.constant dense<0.000000e+00> : vector<128xf32>
    %35 = vector.multi_reduction <add>, %32, %cst_18 [0] : vector<8x128xf32> to vector<128xf32>
    %36 = vector.shape_cast %35 : vector<128xf32> to vector<1x128xf32>
    %cst_19 = arith.constant 1.250000e-01 : f32
    %37 = vector.broadcast %cst_19 : f32 to vector<1x128xf32>
    %38 = arith.mulf %36, %37 : vector<1x128xf32>
    %39 = arith.mulf %32, %32 : vector<8x128xf32>
    %cst_20 = arith.constant dense<0.000000e+00> : vector<128xf32>
    %40 = vector.multi_reduction <add>, %39, %cst_20 [0] : vector<8x128xf32> to vector<128xf32>
    %41 = vector.shape_cast %40 : vector<128xf32> to vector<1x128xf32>
    %cst_21 = arith.constant 1.250000e-01 : f32
    %42 = vector.broadcast %cst_21 : f32 to vector<1x128xf32>
    %43 = arith.mulf %41, %42 : vector<1x128xf32>
    %44 = arith.mulf %38, %38 : vector<1x128xf32>
    %45 = arith.subf %43, %44 : vector<1x128xf32>
    %cst_22 = arith.constant 0.000000e+00 : f32
    %46 = vector.broadcast %cst_22 : f32 to vector<1x128xf32>
    %47 = arith.maximumf %45, %46 : vector<1x128xf32>
    %cst_23 = arith.constant 9.99999974E-6 : f32
    %48 = vector.broadcast %cst_23 : f32 to vector<1x128xf32>
    %49 = arith.addf %47, %48 : vector<1x128xf32>
    %50 = math.rsqrt %49 : vector<1x128xf32>
    %51 = arith.mulf %33, %50 : vector<1x128xf32>
    %52 = arith.mulf %38, %51 : vector<1x128xf32>
    %53 = arith.subf %34, %52 : vector<1x128xf32>
    %54 = vector.broadcast %51 : vector<1x128xf32> to vector<8x128xf32>
    %55 = arith.mulf %32, %54 : vector<8x128xf32>
    %56 = vector.broadcast %53 : vector<1x128xf32> to vector<8x128xf32>
    %57 = arith.addf %55, %56 : vector<8x128xf32>
    %cst_24 = arith.constant 0.000000e+00 : f32
    %58 = vector.broadcast %cst_24 : f32 to vector<8x128xf32>
    %59 = arith.maximumf %57, %58 : vector<8x128xf32>
    %60 = arith.truncf %59 : vector<8x128xf32> to vector<8x128xbf16>
    %c0_25 = arith.constant 0 : index
    %c0_26 = arith.constant 0 : index
    %61 = vector.load %arg3[%c0_25, %c0_26] : memref<128x128xbf16, #tpu.memory_space<vmem>>, vector<128x128xbf16>
    %cst_27 = arith.constant dense<0.000000e+00> : vector<8x128xf32>
    %62 = tpu.matmul %60, %61, %cst_27 {dimension_numbers = #tpu.dot_dimension_numbers<[1], [0], [0], [1], [0, 0, 1, 1], [], []>} : vector<8x128xbf16>, vector<128x128xbf16>, vector<8x128xf32> -> vector<8x128xf32>
    %c4 = arith.constant 4 : index
    %c0_28 = arith.constant 0 : index
    %63 = vector.load %arg5[%c4, %c0_28] : memref<8x128xf32, #tpu.memory_space<vmem>>, vector<1x128xf32>
    %c5 = arith.constant 5 : index
    %c0_29 = arith.constant 0 : index
    %64 = vector.load %arg5[%c5, %c0_29] : memref<8x128xf32, #tpu.memory_space<vmem>>, vector<1x128xf32>
    %cst_30 = arith.constant dense<0.000000e+00> : vector<128xf32>
    %65 = vector.multi_reduction <add>, %62, %cst_30 [0] : vector<8x128xf32> to vector<128xf32>
    %66 = vector.shape_cast %65 : vector<128xf32> to vector<1x128xf32>
    %cst_31 = arith.constant 1.250000e-01 : f32
    %67 = vector.broadcast %cst_31 : f32 to vector<1x128xf32>
    %68 = arith.mulf %66, %67 : vector<1x128xf32>
    %69 = arith.mulf %62, %62 : vector<8x128xf32>
    %cst_32 = arith.constant dense<0.000000e+00> : vector<128xf32>
    %70 = vector.multi_reduction <add>, %69, %cst_32 [0] : vector<8x128xf32> to vector<128xf32>
    %71 = vector.shape_cast %70 : vector<128xf32> to vector<1x128xf32>
    %cst_33 = arith.constant 1.250000e-01 : f32
    %72 = vector.broadcast %cst_33 : f32 to vector<1x128xf32>
    %73 = arith.mulf %71, %72 : vector<1x128xf32>
    %74 = arith.mulf %68, %68 : vector<1x128xf32>
    %75 = arith.subf %73, %74 : vector<1x128xf32>
    %cst_34 = arith.constant 0.000000e+00 : f32
    %76 = vector.broadcast %cst_34 : f32 to vector<1x128xf32>
    %77 = arith.maximumf %75, %76 : vector<1x128xf32>
    %cst_35 = arith.constant 9.99999974E-6 : f32
    %78 = vector.broadcast %cst_35 : f32 to vector<1x128xf32>
    %79 = arith.addf %77, %78 : vector<1x128xf32>
    %80 = math.rsqrt %79 : vector<1x128xf32>
    %81 = arith.mulf %63, %80 : vector<1x128xf32>
    %82 = arith.mulf %68, %81 : vector<1x128xf32>
    %83 = arith.subf %64, %82 : vector<1x128xf32>
    %84 = vector.broadcast %81 : vector<1x128xf32> to vector<8x128xf32>
    %85 = arith.mulf %62, %84 : vector<8x128xf32>
    %86 = vector.broadcast %83 : vector<1x128xf32> to vector<8x128xf32>
    %87 = arith.addf %85, %86 : vector<8x128xf32>
    %cst_36 = arith.constant 0.000000e+00 : f32
    %88 = vector.broadcast %cst_36 : f32 to vector<8x128xf32>
    %89 = arith.maximumf %87, %88 : vector<8x128xf32>
    %90 = arith.truncf %89 : vector<8x128xf32> to vector<8x128xbf16>
    %c0_37 = arith.constant 0 : index
    %c0_38 = arith.constant 0 : index
    %91 = vector.load %arg4[%c0_37, %c0_38] : memref<128x128xbf16, #tpu.memory_space<vmem>>, vector<128x128xbf16>
    %cst_39 = arith.constant dense<0.000000e+00> : vector<8x128xf32>
    %92 = tpu.matmul %90, %91, %cst_39 {dimension_numbers = #tpu.dot_dimension_numbers<[1], [0], [0], [1], [0, 0, 1, 1], [], []>} : vector<8x128xbf16>, vector<128x128xbf16>, vector<8x128xf32> -> vector<8x128xf32>
    %c6 = arith.constant 6 : index
    %c0_40 = arith.constant 0 : index
    %93 = vector.load %arg5[%c6, %c0_40] : memref<8x128xf32, #tpu.memory_space<vmem>>, vector<1x128xf32>
    %94 = vector.broadcast %93 : vector<1x128xf32> to vector<8x128xf32>
    %95 = arith.addf %92, %94 : vector<8x128xf32>
    %c0_41 = arith.constant 0 : index
    %c0_42 = arith.constant 0 : index
    %96 = vector.load %arg6[%c0_41, %c0_42] : memref<8x128xf32, #tpu.memory_space<vmem>>, vector<8x128xf32>
    tpu.vector_store %arg6[%c0_41, %c0_42], %95 {strides = array<i32>} : memref<8x128xf32, #tpu.memory_space<vmem>>, vector<8x128xf32>,
    return
  }
}

</mosaic_0001>

<bundles_post_ra>
// kernel: tpu_custom_call.1
= control target key start
LH: loop header
LB: loop body
LE: loop exit
PB: predicated region body
PF: predicated region fallthrough
CT: control target
= control target key end

     0   :  { %11 = vsyncpa [#allocation3], 0  ;;  %s1111_s0 = inlined_call_operand.hbm [shape: bf16[8,128], index: 0, kind: input, shape index: {}]   ;;  %s1112_s1 = inlined_call_operand.hbm [shape: bf16[128,128], index: 1, kind: input, shape index: {}]   ;;  %s1113_s2 = inlined_call_operand.hbm [shape: bf16[128,128], index: 2, kind: input, shape index: {}]   ;;  %s1114_s3 = inlined_call_operand.hbm [shape: bf16[128,128], index: 3, kind: input, shape index: {}]   ;;  %s1115_s4 = inlined_call_operand.hbm [shape: bf16[128,128], index: 4, kind: input, shape index: {}]   ;;  %s1116_s5 = inlined_call_operand.vmem [shape: f32[8,128], index: 5, kind: input, shape index: {}]   ;;  %s1117_s6 = inlined_call_operand.hbm [shape: f32[8,128], index: 6, kind: output, shape index: {}]  }
   0x1   :  { %12 = vsyncpa [#allocation6], 0 }
   0x2   :  { %13 = vsyncpa [#allocation9], 0 }
   0x3   :  { %14 = vsyncpa [#allocation4], 0  ;;  %s967_s21 = smov [#allocation5]  }
   0x4   :  { %s30_s22 = sshll.u32 %s967_s21, 4  ;;  %s31_s22 = int_to_ptr.vmem [resolvable:$true] %s30_s22 }
   0x5   :  { %s847_s23 = scalar_lea.vmem %s31_s22, 1024  ;;  %p852_p1 = scmp.lt.s32.totalorder %s31_s22, %s31_s22 }
   0x6   :  { %p848_p0 = scmp.ne.s32.totalorder %s31_s22, %s847_s23  ;;  %p853_p2 = scmp.lt.s32.totalorder %s847_s23, %s847_s23 }
   0x8   :  { %p854_p3 = por %p853_p2, %p852_p1 }
   0xa   :  { %p855_p4 = pnand %p854_p3, %p848_p0 }
   0xc   :  { %858 = shalt.err (!%p855_p4)
}
   0xd   :  { %s968_s24 = smov 64   ;;  %s969_s25 = smov 4  }
   0xe   :  { %36 = dma.hbm_to_vmem [thread:$0]  %s1112_s1, 1024, %s31_s22, [#allocation6], %s968_s24, %s968_s24, %s969_s25  }
   0xf   :  { %s970_s28 = smov [#allocation8]   ;;  %s971_s30 = smov [#allocation2]  }
  0x10   :  { %s54_s29 = sshll.u32 %s970_s28, 4  ;;  %s21_s7 = sshll.u32 %s971_s30, 4  ;;  %s55_s29 = int_to_ptr.vmem [resolvable:$true] %s54_s29  ;;  %s22_s7 = int_to_ptr.vmem [resolvable:$true] %s21_s7 }
  0x11   :  { %s867_s8 = scalar_lea.vmem %s55_s29, 1024  ;;  %p872_p6 = scmp.lt.s32.totalorder %s55_s29, %s55_s29 }
  0x12   :  { %p868_p5 = scmp.ne.s32.totalorder %s55_s29, %s867_s8  ;;  %p873_p7 = scmp.lt.s32.totalorder %s867_s8, %s867_s8 }
  0x14   :  { %p874_p8 = por %p873_p7, %p872_p6 }
  0x16   :  { %p875_p9 = pnand %p874_p8, %p868_p5 }
  0x18   :  { %878 = shalt.err (!%p875_p9)
}
  0x19   :  { %60 = dma.hbm_to_vmem [thread:$0]  %s1114_s3, 1024, %s55_s29, [#allocation9], %s968_s24, %s968_s24, %s969_s25  }
  0x1a   :  { %s887_s1 = scalar_lea.vmem %s22_s7, 64  ;;  %p892_p11 = scmp.lt.s32.totalorder %s22_s7, %s22_s7 }
  0x1b   :  { %p888_p10 = scmp.ne.s32.totalorder %s22_s7, %s887_s1  ;;  %p893_p12 = scmp.lt.s32.totalorder %s887_s1, %s887_s1 }
  0x1d   :  { %p894_p13 = por %p893_p12, %p892_p11 }
  0x1f   :  { %p895_p0 = pnand %p894_p13, %p888_p10 }
  0x21   :  { %898 = shalt.err (!%p895_p0)
}
  0x22   :  { %24 = dma.hbm_to_vmem [thread:$0]  %s1111_s0, 64, %s22_s7, [#allocation3]  }
  0x23   :  { %s972_s13 = smov [#allocation7]   ;;  %s973_s15 = smov [#allocation10]  }
  0x24   :  { %s42_s14 = sshll.u32 %s972_s13, 4  ;;  %s66_s16 = sshll.u32 %s973_s15, 4  ;;  %s43_s14 = int_to_ptr.vmem [resolvable:$true] %s42_s14  ;;  %s67_s16 = int_to_ptr.vmem [resolvable:$true] %s66_s16 }
  0x25   :  { %s907_s17 = scalar_lea.vmem %s43_s14, 1024  ;;  %p912_p2 = scmp.lt.s32.totalorder %s43_s14, %s43_s14 }
  0x26   :  { %p908_p1 = scmp.ne.s32.totalorder %s43_s14, %s907_s17  ;;  %p913_p3 = scmp.lt.s32.totalorder %s907_s17, %s907_s17 }
  0x28   :  { %p914_p4 = por %p913_p3, %p912_p2 }
  0x2a   :  { %p915_p5 = pnand %p914_p4, %p908_p1 }
  0x2c   :  { %918 = shalt.err (!%p915_p5)
}
  0x2d   :  { %48 = dma.hbm_to_vmem [thread:$0]  %s1113_s2, 1024, %s43_s14, [#allocation6], %s968_s24, %s968_s24, %s969_s25  }
  0x2e   :  { %s927_s0 = scalar_lea.vmem %s67_s16, 1024  ;;  %p932_p7 = scmp.lt.s32.totalorder %s67_s16, %s67_s16 }
  0x2f   :  { %p928_p6 = scmp.ne.s32.totalorder %s67_s16, %s927_s0  ;;  %p933_p8 = scmp.lt.s32.totalorder %s927_s0, %s927_s0 }
  0x31   :  { %p934_p9 = por %p933_p8, %p932_p7 }
  0x33   :  { %p935_p10 = pnand %p934_p9, %p928_p6 }
  0x35   :  { %938 = shalt.err (!%p935_p10)
}
  0x36   :  { %72 = dma.hbm_to_vmem [thread:$0]  %s1115_s4, 1024, %s67_s16, [#allocation9], %s968_s24, %s968_s24, %s969_s25  }
  0x37   :  { %959 = dma.done.wait [#allocation3], 64  }
  0x38   :  { %960 = vsyncadd [#allocation3], 4294967232 }
  0x39   :  { %961 = dma.done.wait [#allocation6], 2048  }
  0x3a   :  { %962 = vsyncadd [#allocation6], 4294965248 }
  0x3b   :  { %963 = dma.done.wait [#allocation9], 2048  }
  0x3c   :  { %964 = vsyncadd [#allocation9], 4294965248  ;;  %v974_v0 = vmov 0.0   ;;  %vm975_vm0 = vmmov 0   ;;  %v801_v1 = vld [vmem:[#allocation5 + $0x38] sm:$0xff]   ;;  %v802_v2 = vld [vmem:[#allocation5 + $0x30] sm:$0xff]   ;;  %v221_v41 = vlaneseq }
  0x3d   :  { %711 = vmatprep.subr.bf16.mxu0 %v974_v0  ;;  %727 = vmatprep.mubr.msk.bf16.mxu0 %vm975_vm0, %v974_v0  ;;  %v803_v3 = vld [vmem:[#allocation5 + $0x28] sm:$0xff]   ;;  %v804_v4 = vld [vmem:[#allocation5 + $0x20] sm:$0xff]   ;;  %v805_v5 = vld [vmem:[#allocation5 + $0x18] sm:$0xff]   ;;  %s976_s9 = smov [#allocation11]  }
  0x3e   :  { %731 = vmatprep.subr.bf16.mxu1 %v974_v0  ;;  %747 = vmatprep.mubr.msk.bf16.mxu1 %vm975_vm0, %v974_v0  ;;  %v806_v6 = vld [vmem:[#allocation5 + $0x10] sm:$0xff]   ;;  %v807_v7 = vld [vmem:[#allocation5 + $0x8] sm:$0xff]   ;;  %v808_v8 = vld [vmem:[#allocation5] sm:$0xff]   ;;  %v222_v42 = vshrl.u32 %v221_v41, 7  ;;  %s631_s10 = sshll.u32 %s976_s9, 4  ;;  %s632_s10 = int_to_ptr.vmem [resolvable:$true] %s631_s10 }
  0x3f   :  { %712 = vmatpush3.bf16.msra.mxu0 %v801_v1  ;;  %v91_v9 = vld [vmem:[#allocation2] sm:$0xf]  ;;  %v810_v11 = vld [vmem:[#allocation7 + $0x30] sm:$0xff]   ;;  %v811_v12 = vld [vmem:[#allocation7 + $0x28] sm:$0xff]   ;;  %s939_s1 = scalar_lea.vmem %s632_s10, 128  ;;  %p944_p12 = scmp.lt.s32.totalorder %s632_s10, %s632_s10 }
  0x40   :  { %713 = vmatprep.subr.bf16.mxu0 %v974_v0  ;;  %v809_v10 = vld [vmem:[#allocation7 + $0x38] sm:$0xff]   ;;  %v812_v13 = vld [vmem:[#allocation7 + $0x20] sm:$0xff]   ;;  %v814_v15 = vld [vmem:[#allocation7 + $0x10] sm:$0xff]   ;;  %v1066_v44 = vsub.s32 0, %v222_v42  ;;  %p940_p11 = scmp.ne.s32.totalorder %s632_s10, %s939_s1  ;;  %p945_p13 = scmp.lt.s32.totalorder %s939_s1, %s939_s1 }
  0x41   :  { %732 = vmatpush3.bf16.msra.mxu1 %v809_v10  ;;  %v813_v14 = vld [vmem:[#allocation7 + $0x18] sm:$0xff]   ;;  %v815_v16 = vld [vmem:[#allocation7 + $0x8] sm:$0xff]   ;;  %v816_v17 = vld [vmem:[#allocation7] sm:$0xff]  }
  0x42   :  { %733 = vmatprep.subr.bf16.mxu1 %v974_v0  ;;  %v196_v43 = vld [vmem:[%s1116_s5] sm:$0x1]  ;;  %v197_v47 = vld [vmem:[%s1116_s5 + $0x1] sm:$0x1]  ;;  %v818_v57 = vld [vmem:[#allocation8 + $0x30] sm:$0xff]   ;;  %p946_p0 = por %p945_p13, %p944_p12 }
  0x43   :  { %714 = vmatpush3.bf16.msra.mxu0 %v802_v2  ;;  %v817_v56 = vld [vmem:[#allocation8 + $0x38] sm:$0xff]   ;;  %v819_v58 = vld [vmem:[#allocation8 + $0x28] sm:$0xff]   ;;  %v820_v59 = vld [vmem:[#allocation8 + $0x20] sm:$0xff]  }
  0x44   :  { %715 = vmatprep.subr.bf16.mxu0 %v974_v0  ;;  %v821_v60 = vld [vmem:[#allocation8 + $0x18] sm:$0xff]   ;;  %v822_v61 = vld [vmem:[#allocation8 + $0x10] sm:$0xff]   ;;  %v823_v62 = vld [vmem:[#allocation8 + $0x8] sm:$0xff]   ;;  %p947_p1 = pnand %p946_p0, %p940_p11 }
  0x45   :  { %734 = vmatpush3.bf16.msra.mxu1 %v810_v11  ;;  %v824_v63 = vld [vmem:[#allocation8] sm:$0xff]   ;;  %v830_v41 = vld [vmem:[#allocation10 + $0x10] sm:$0xff]   ;;  %v831_v42 = vld [vmem:[#allocation10 + $0x8] sm:$0xff]  }
  0x46   :  { %735 = vmatprep.subr.bf16.mxu1 %v974_v0 }
  0x47   :  { %716 = vmatpush3.bf16.msra.mxu0 %v803_v3 }
  0x48   :  { %717 = vmatprep.subr.bf16.mxu0 %v974_v0 }
  0x49   :  { %736 = vmatpush3.bf16.msra.mxu1 %v811_v12 }
  0x4a   :  { %737 = vmatprep.subr.bf16.mxu1 %v974_v0 }
  0x4b   :  { %718 = vmatpush3.bf16.msra.mxu0 %v804_v4 }
  0x4c   :  { %719 = vmatprep.subr.bf16.mxu0 %v974_v0 }
  0x4d   :  { %738 = vmatpush3.bf16.msra.mxu1 %v812_v13 }
  0x4e   :  { %739 = vmatprep.subr.bf16.mxu1 %v974_v0 }
  0x4f   :  { %720 = vmatpush3.bf16.msra.mxu0 %v805_v5 }
  0x50   :  { %721 = vmatprep.subr.bf16.mxu0 %v974_v0 }
  0x51   :  { %740 = vmatpush3.bf16.msra.mxu1 %v813_v14 }
  0x52   :  { %741 = vmatprep.subr.bf16.mxu1 %v974_v0 }
  0x53   :  { %722 = vmatpush3.bf16.msra.mxu0 %v806_v6 }
  0x54   :  { %723 = vmatprep.subr.bf16.mxu0 %v974_v0 }
  0x55   :  { %742 = vmatpush3.bf16.msra.mxu1 %v814_v15 }
  0x56   :  { %743 = vmatprep.subr.bf16.mxu1 %v974_v0 }
  0x57   :  { %724 = vmatpush3.bf16.msra.mxu0 %v807_v7 }
  0x58   :  { %725 = vmatprep.subr.bf16.mxu0 %v974_v0 }
  0x59   :  { %744 = vmatpush3.bf16.msra.mxu1 %v815_v16 }
  0x5a   :  { %745 = vmatprep.subr.bf16.mxu1 %v974_v0 }
  0x5b   :  { %726 = vmatpush3.bf16.msra.mxu0 %v808_v8 }
  0x5c   :  { %751 = vmatprep.subr.bf16.mxu0 %v974_v0 }
  0x5d   :  { %746 = vmatpush3.bf16.msra.mxu1 %v816_v17 }
  0x5e   :  { %728 = vmatmul.mubr.bf16.vlgmr.msra.gmra.mxu0 %v91_v9  ;;  %771 = vmatprep.subr.bf16.mxu1 %v974_v0 }
  0x5f   :  { %767 = vmatprep.mubr.msk.bf16.mxu0 %vm975_vm0, %v974_v0  ;;  %752 = vmatpush3.bf16.msra.mxu0 %v817_v56 }
  0x60   :  { %753 = vmatprep.subr.bf16.mxu0 %v974_v0 }
  0x63   :  { %754 = vmatpush3.bf16.msra.mxu0 %v818_v57 }
  0x64   :  { %755 = vmatprep.subr.bf16.mxu0 %v974_v0 }
  0x67   :  { %756 = vmatpush3.bf16.msra.mxu0 %v819_v58 }
  0x68   :  { %757 = vmatprep.subr.bf16.mxu0 %v974_v0 }
  0x6b   :  { %758 = vmatpush3.bf16.msra.mxu0 %v820_v59 }
  0x6c   :  { %759 = vmatprep.subr.bf16.mxu0 %v974_v0 }
  0x6f   :  { %760 = vmatpush3.bf16.msra.mxu0 %v821_v60 }
  0x70   :  { %761 = vmatprep.subr.bf16.mxu0 %v974_v0 }
  0x73   :  { %762 = vmatpush3.bf16.msra.mxu0 %v822_v61 }
  0x74   :  { %763 = vmatprep.subr.bf16.mxu0 %v974_v0 }
  0x77   :  { %764 = vmatpush3.bf16.msra.mxu0 %v823_v62 }
  0x78   :  { %765 = vmatprep.subr.bf16.mxu0 %v974_v0 }
  0x7b   :  { %766 = vmatpush3.bf16.msra.mxu0 %v824_v63 }
 0x11e   :  { %v190_v18 = vpop.f32.mrf.mxu0 }
 0x11f   :  { %v198_v19 = vrot.slane %v190_v18, 4  ;;  %v205_v20 = vmul.f32 %v190_v18, %v190_v18 }
 0x120   :  { %v729_v21 = vpop.f32.mrf.mxu0 }
 0x121   :  { %v199_v22 = vadd.f32 %v198_v19, %v190_v18  ;;  %v206_v23 = vrot.slane %v205_v20, 4 }
 0x122   :  { %v193_v24 = vpop.f32.mrf.mxu0 }
 0x123   :  { %v200_v25 = vrot.slane %v199_v22, 2  ;;  %v207_v26 = vadd.f32 %v206_v23, %v205_v20  ;;  %v337_v24 = vld [vmem:[%s1116_s5 + $0x2] sm:$0x1] }
 0x124   :  { %v730_v27 = vpop.f32.mrf.mxu0 }
 0x125   :  { %v201_v28 = vadd.f32 %v200_v25, %v199_v22  ;;  %v208_v29 = vrot.slane %v207_v26, 2  ;;  %v338_v27 = vld [vmem:[%s1116_s5 + $0x3] sm:$0x1] }
 0x127   :  { %v202_v30 = vrot.slane %v201_v28, 1  ;;  %v209_v31 = vadd.f32 %v208_v29, %v207_v26 }
 0x129   :  { %v203_v32 = vadd.f32 %v202_v30, %v201_v28  ;;  %v210_v33 = vrot.slane %v209_v31, 1 }
 0x12b   :  { %v204_v34 = vmul.f32 0.125, %v203_v32  ;;  %v211_v35 = vadd.f32 %v210_v33, %v209_v31 }
 0x12d   :  { %v212_v36 = vmul.f32 0.125, %v211_v35  ;;  %v213_v37 = vmul.f32 %v204_v34, %v204_v34 }
 0x12f   :  { %v214_v38 = vsub.f32 %v212_v36, %v213_v37  ;;  %v825_v36 = vld [vmem:[#allocation10 + $0x38] sm:$0xff]   ;;  %v826_v37 = vld [vmem:[#allocation10 + $0x30] sm:$0xff]  }
 0x131   :  { %v215_v39 = vmax.f32 %v214_v38, 0.0  ;;  %v827_v38 = vld [vmem:[#allocation10 + $0x28] sm:$0xff]  }
 0x133   :  { %v216_v40 = vadd.f32 1e-05, %v215_v39  ;;  %v828_v39 = vld [vmem:[#allocation10 + $0x20] sm:$0xff]  }
 0x135   :  { %833 = vrsqrt.f32 %v216_v40  ;;  %v829_v40 = vld [vmem:[#allocation10 + $0x18] sm:$0xff]  }
 0x142   :  { %v834_v45 = vpop.eup %833 }
 0x143   :  { %v218_v46 = vmul.f32 %v834_v45, %v196_v43  ;;  %v832_v43 = vld [vmem:[#allocation10] sm:$0xff]  }
 0x145   :  { %v224_v48 = vrot.slane %v218_v46, %v1066_v44  ;;  %v219_v49 = vmul.f32 %v218_v46, %v204_v34 }
 0x147   :  { %v220_v50 = vsub.f32 %v197_v47, %v219_v49  ;;  %v225_v51 = vmul.f32 %v224_v48, %v190_v18 }
 0x149   :  { %v229_v52 = vrot.slane %v220_v50, %v1066_v44 }
 0x14b   :  { %v230_v53 = vadd.f32 %v229_v52, %v225_v51 }
 0x14d   :  { %v231_v54 = vmax.f32 %v230_v53, 0.0 }
 0x14f   :  { %v232_v55 = vpack.c.bf16 %v231_v54, %v231_v54 }
 0x151   :  { %748 = vmatmul.mubr.bf16.vlgmr.msra.gmra.mxu1 %v232_v55 }
 0x152   :  { %787 = vmatprep.mubr.msk.bf16.mxu1 %vm975_vm0, %v974_v0  ;;  %772 = vmatpush3.bf16.msra.mxu1 %v825_v36 }
 0x153   :  { %773 = vmatprep.subr.bf16.mxu1 %v974_v0 }
 0x156   :  { %774 = vmatpush3.bf16.msra.mxu1 %v826_v37 }
 0x157   :  { %775 = vmatprep.subr.bf16.mxu1 %v974_v0 }
 0x15a   :  { %776 = vmatpush3.bf16.msra.mxu1 %v827_v38 }
 0x15b   :  { %777 = vmatprep.subr.bf16.mxu1 %v974_v0 }
 0x15e   :  { %778 = vmatpush3.bf16.msra.mxu1 %v828_v39 }
 0x15f   :  { %779 = vmatprep.subr.bf16.mxu1 %v974_v0 }
 0x162   :  { %780 = vmatpush3.bf16.msra.mxu1 %v829_v40 }
 0x163   :  { %781 = vmatprep.subr.bf16.mxu1 %v974_v0 }
 0x166   :  { %782 = vmatpush3.bf16.msra.mxu1 %v830_v41 }
 0x167   :  { %783 = vmatprep.subr.bf16.mxu1 %v974_v0 }
 0x16a   :  { %784 = vmatpush3.bf16.msra.mxu1 %v831_v42 }
 0x16b   :  { %785 = vmatprep.subr.bf16.mxu1 %v974_v0 }
 0x16e   :  { %786 = vmatpush3.bf16.msra.mxu1 %v832_v43 }
 0x211   :  { %v331_v1 = vpop.f32.mrf.mxu1 }
 0x212   :  { %v339_v2 = vrot.slane %v331_v1, 4  ;;  %v346_v3 = vmul.f32 %v331_v1, %v331_v1 }
 0x213   :  { %v749_v4 = vpop.f32.mrf.mxu1 }
 0x214   :  { %v340_v5 = vadd.f32 %v339_v2, %v331_v1  ;;  %v347_v6 = vrot.slane %v346_v3, 4  ;;  %v478_v4 = vld [vmem:[%s1116_s5 + $0x4] sm:$0x1] }
 0x215   :  { %v334_v7 = vpop.f32.mrf.mxu1 }
 0x216   :  { %v341_v8 = vrot.slane %v340_v5, 2  ;;  %v348_v9 = vadd.f32 %v347_v6, %v346_v3  ;;  %v479_v7 = vld [vmem:[%s1116_s5 + $0x5] sm:$0x1] }
 0x217   :  { %v750_v10 = vpop.f32.mrf.mxu1 }
 0x218   :  { %v342_v11 = vadd.f32 %v341_v8, %v340_v5  ;;  %v349_v12 = vrot.slane %v348_v9, 2 }
 0x21a   :  { %v343_v13 = vrot.slane %v342_v11, 1  ;;  %v350_v14 = vadd.f32 %v349_v12, %v348_v9 }
 0x21c   :  { %v344_v15 = vadd.f32 %v343_v13, %v342_v11  ;;  %v351_v16 = vrot.slane %v350_v14, 1 }
 0x21e   :  { %v345_v17 = vmul.f32 0.125, %v344_v15  ;;  %v352_v18 = vadd.f32 %v351_v16, %v350_v14  ;;  %v666_v16 = vld [vmem:[%s1116_s5 + $0x6] ss:$0 sm:$0xff] }
 0x220   :  { %v353_v19 = vmul.f32 0.125, %v352_v18  ;;  %v354_v20 = vmul.f32 %v345_v17, %v345_v17 }
 0x222   :  { %v355_v21 = vsub.f32 %v353_v19, %v354_v20 }
 0x224   :  { %v356_v22 = vmax.f32 %v355_v21, 0.0 }
 0x226   :  { %v357_v23 = vadd.f32 1e-05, %v356_v22 }
 0x228   :  { %835 = vrsqrt.f32 %v357_v23 }
 0x235   :  { %v836_v25 = vpop.eup %835 }
 0x236   :  { %v359_v26 = vmul.f32 %v836_v25, %v337_v24 }
 0x238   :  { %v360_v28 = vmul.f32 %v359_v26, %v345_v17  ;;  %v365_v29 = vrot.slane %v359_v26, %v1066_v44 }
 0x23a   :  { %v361_v30 = vsub.f32 %v338_v27, %v360_v28  ;;  %v366_v31 = vmul.f32 %v365_v29, %v331_v1 }
 0x23c   :  { %v370_v32 = vrot.slane %v361_v30, %v1066_v44 }
 0x23e   :  { %v371_v33 = vadd.f32 %v370_v32, %v366_v31 }
 0x240   :  { %v372_v34 = vmax.f32 %v371_v33, 0.0 }
 0x242   :  { %v373_v35 = vpack.c.bf16 %v372_v34, %v372_v34 }
 0x244   :  { %768 = vmatmul.mubr.bf16.vlgmr.msra.gmra.mxu0 %v373_v35 }
 0x304   :  { %v472_v45 = vpop.f32.mrf.mxu0 }
 0x305   :  { %v480_v46 = vrot.slane %v472_v45, 4  ;;  %v487_v47 = vmul.f32 %v472_v45, %v472_v45 }
 0x306   :  { %v769_v48 = vpop.f32.mrf.mxu0 }
 0x307   :  { %v481_v49 = vadd.f32 %v480_v46, %v472_v45  ;;  %v488_v50 = vrot.slane %v487_v47, 4 }
 0x308   :  { %v475_v51 = vpop.f32.mrf.mxu0 }
 0x309   :  { %v482_v52 = vrot.slane %v481_v49, 2  ;;  %v489_v53 = vadd.f32 %v488_v50, %v487_v47 }
 0x30a   :  { %v770_v54 = vpop.f32.mrf.mxu0 }
 0x30b   :  { %v483_v55 = vadd.f32 %v482_v52, %v481_v49  ;;  %v490_v56 = vrot.slane %v489_v53, 2 }
 0x30d   :  { %v484_v57 = vrot.slane %v483_v55, 1  ;;  %v491_v58 = vadd.f32 %v490_v56, %v489_v53 }
 0x30f   :  { %v485_v59 = vadd.f32 %v484_v57, %v483_v55  ;;  %v492_v60 = vrot.slane %v491_v58, 1 }
 0x311   :  { %v486_v61 = vmul.f32 0.125, %v485_v59  ;;  %v493_v0 = vadd.f32 %v492_v60, %v491_v58 }
 0x313   :  { %v494_v62 = vmul.f32 0.125, %v493_v0  ;;  %v495_v63 = vmul.f32 %v486_v61, %v486_v61 }
 0x315   :  { %v496_v1 = vsub.f32 %v494_v62, %v495_v63 }
 0x317   :  { %v497_v2 = vmax.f32 %v496_v1, 0.0 }
 0x319   :  { %v498_v3 = vadd.f32 1e-05, %v497_v2 }
 0x31b   :  { %837 = vrsqrt.f32 %v498_v3 }
 0x328   :  { %v838_v5 = vpop.eup %837 }
 0x329   :  { %v500_v6 = vmul.f32 %v838_v5, %v478_v4 }
 0x32b   :  { %v501_v8 = vmul.f32 %v500_v6, %v486_v61  ;;  %v506_v9 = vrot.slane %v500_v6, %v1066_v44 }
 0x32d   :  { %v502_v10 = vsub.f32 %v479_v7, %v501_v8  ;;  %v507_v11 = vmul.f32 %v506_v9, %v472_v45 }
 0x32f   :  { %v511_v12 = vrot.slane %v502_v10, %v1066_v44 }
 0x331   :  { %v512_v13 = vadd.f32 %v511_v12, %v507_v11 }
 0x333   :  { %v513_v14 = vmax.f32 %v512_v13, 0.0 }
 0x335   :  { %v514_v15 = vpack.c.bf16 %v513_v14, %v513_v14 }
 0x337   :  { %788 = vmatmul.mubr.bf16.vlgmr.msra.gmra.mxu1 %v514_v15 }
 0x3f7   :  { %v618_v17 = vpop.f32.mrf.mxu1 }
 0x3f8   :  { %v619_v18 = vadd.f32 %v666_v16, %v618_v17 }
 0x3f9   :  { %v789_v19 = vpop.f32.mrf.mxu1 }
 0x3fa   :  { %624 = vst [vmem:[#allocation11] sm:$0xff] %v619_v18 }
 0x3fb   :  { %v621_v20 = vpop.f32.mrf.mxu1 }
 0x3fc   :  { %950 = shalt.err (!%p947_p1)
}
 0x3fd   :  { %634 = dma.vmem_to_hbm [thread:$0]  %s632_s10, 128, %s1117_s6, [#allocation4]   ;;  %v790_v44 = vpop.f32.mrf.mxu1 }
 0x3fe   :  { %965 = dma.done.wait [#allocation4], 128  }
 0x3ff   :  { %966 = vsyncadd [#allocation4], 4294967168 }
 0x400   :  { %638 = vsyncpa [#allocation3], 1 }
 0x401   :  { %639 = vsyncpa [#allocation6], 1 }
 0x402   :  { %640 = vsyncpa [#allocation9], 1 }
 0x403   :  { %641 = vsyncpa [#allocation4], 1 }

</bundles_post_ra>
